<compile_context>
chip_gen: v7x
topology: tpu7x:2x2x1
jax: 0.10.0
libtpu: 0.0.40
codegen_flags: <defaults>
</compile_context>

<pallas_src>
import functools

import jax
import jax.numpy as jnp
import numpy as np
from jax.experimental import pallas as pl
from jax.experimental.pallas import tpu as pltpu


def _round_up(x, m):
    return (x + m - 1) // m * m


def _pick_tile_rows(hw):
    """Largest sublane-aligned row tile <= 2048 dividing H*W (>= 2 pipeline steps)."""
    for t in (2048, 1024, 512, 256, 128, 64, 32, 16, 8):
        if t < hw and hw % t == 0:
            return t
    return hw


# ----------------------------- Pallas kernel --------------------------------

def two_view_tile_kernel(p_ref, wc_ref, bc_ref, wfc_ref, out_ref, acc_ref, *, hw):
    """One (view, image, row-tile) grid step of the MultiInputModel forward.

    p_ref   : (TR, KKCp)   bf16  im2col patch rows of image `b`, view `v`
    wc_ref  : (KKCp, Cp)   bf16  conv weight (im2col layout), zero-padded
    bc_ref  : (1, Cp)      f32   conv bias, zero-padded
    wfc_ref : (Cp, Np)     bf16  classifier weight slice of this view, zero-padded
    out_ref : (1, B, Np)   f32   per-view partial logits (row b written on last tile)
    acc_ref : (1, Cp)      f32   running sum of ReLU(conv) rows of image b
    """
    b = pl.program_id(1)
    r = pl.program_id(2)

    @pl.when(r == 0)
    def _init():
        acc_ref[...] = jnp.zeros_like(acc_ref)

    # Conv-as-matmul on this row tile (bf16 x bf16, f32 accumulation), + bias, ReLU.
    y = jnp.dot(p_ref[...], wc_ref[...], preferred_element_type=jnp.float32)
    y = jnp.maximum(y + bc_ref[...], 0.0)                       # (TR, Cp) f32
    # Global-average-pool partial: sublane (XLU) row-sum into the accumulator.
    acc_ref[...] += jnp.sum(y, axis=0, keepdims=True)           # (1, Cp)

    @pl.when(r == pl.num_programs(2) - 1)
    def _epilogue():
        # Adaptive 1x1 avg pool + flatten; nn.Dropout(0.2) is identity in eval mode.
        pooled = acc_ref[...] * (1.0 / hw)                      # (1, Cp) f32
        # This view's contribution to the fused "concat + Linear" classifier.
        part = jnp.dot(pooled.astype(wfc_ref.dtype), wfc_ref[...],
                       preferred_element_type=jnp.float32)      # (1, Np)
        out_ref[0, pl.ds(b, 1), :] = part


# ------------------------------- JAX glue ------------------------------------

def im2col_3x3_same(x_nchw, dtype=jnp.bfloat16):
    """[B, C, H, W] (NCHW) -> patches [B, H*W, 3*3*C] (tap-major, then channel)."""
    k, pad = 3, 1
    x = jnp.transpose(x_nchw, (0, 2, 3, 1)).astype(dtype)       # -> NHWC
    x = jnp.pad(x, ((0, 0), (pad, pad), (pad, pad), (0, 0)))
    B, Hp, Wp, C = x.shape
    H, W = Hp - 2 * pad, Wp - 2 * pad
    taps = [x[:, di:di + H, dj:dj + W, :] for di in range(k) for dj in range(k)]
    p = jnp.stack(taps, axis=3)                                  # [B, H, W, 9, C]
    return p.reshape(B, H * W, k * k * C)


def prepare_params(raw, *, num_classes):
    """One-time packing/zero-padding of parameters into lane-dense bf16 layout."""
    kkc, c_r = raw["w_conv_r"].shape
    c_v = raw["w_conv_v"].shape[1]
    kkc_p = _round_up(kkc, 32)        # keep narrow; bf16 covers the lane cost
    c_p = _round_up(max(c_r, c_v, 128), 128)
    n_p = _round_up(max(num_classes, 128), 128)

    def pad2(w, rows, cols):
        return jnp.pad(w, ((0, rows - w.shape[0]), (0, cols - w.shape[1])))

    w_conv = jnp.stack([pad2(raw["w_conv_r"], kkc_p, c_p),
                        pad2(raw["w_conv_v"], kkc_p, c_p)]).astype(jnp.bfloat16)
    b_conv = jnp.stack([jnp.pad(raw["b_conv_r"], (0, c_p - c_r)),
                        jnp.pad(raw["b_conv_v"], (0, c_p - c_v))]
                       ).reshape(2, 1, c_p).astype(jnp.float32)
    w_fc = jnp.stack([pad2(raw["w_fc"][:c_r], c_p, n_p),
                      pad2(raw["w_fc"][c_r:c_r + c_v], c_p, n_p)]).astype(jnp.bfloat16)
    b_fc = jnp.pad(raw["b_fc"], (0, n_p - num_classes)).astype(jnp.float32)
    return {"w_conv": w_conv, "b_conv": b_conv, "w_fc": w_fc, "b_fc": b_fc,
            "kkc": kkc, "kkc_pad": kkc_p, "num_classes": num_classes}


def multi_input_model_forward(two_views, params, *, tile_rows=None):
    """Forward pass mirroring MultiInputModel.forward (eval mode)."""
    recto, verso = two_views
    B, _, H, W = recto.shape
    hw = H * W
    kkc, kkc_p = params["kkc"], params["kkc_pad"]
    c_p = params["w_conv"].shape[-1]
    n_p = params["b_fc"].shape[-1]

    if tile_rows is None:
        tile_rows = _pick_tile_rows(hw)
    assert hw % tile_rows == 0, "tile_rows must divide H*W"
    n_tiles = hw // tile_rows

    # im2col patches for both views, view-major, bf16.
    # TODO(synk): move this 9x patch expansion in-kernel (shifted-slice conv).
    x = jnp.concatenate([recto, verso], axis=0)                  # (2B, Cin, H, W)
    p = im2col_3x3_same(x, dtype=jnp.bfloat16)                   # (2B, HW, KKC)
    p = jnp.pad(p, ((0, 0), (0, 0), (0, kkc_p - kkc)))
    p = p.reshape(2, B, hw, kkc_p)

    # Explicit VMEM budget: double-buffered patch tiles + resident params + out,
    # with margin.  Fits comfortably under v7x's 64 MiB and v5e's 16 MiB default.
    tile_bytes = tile_rows * kkc_p * 2
    param_bytes = (kkc_p * c_p + c_p * n_p) * 2 + c_p * 4 + B * n_p * 4
    vmem_limit = int(min(48 * 2**20, max(8 * 2**20, 6 * (tile_bytes + param_bytes))))

    out_parts = pl.pallas_call(
        functools.partial(two_view_tile_kernel, hw=hw),
        out_shape=jax.ShapeDtypeStruct((2, B, n_p), jnp.float32),
        grid_spec=pltpu.PrefetchScalarGridSpec(
            num_scalar_prefetch=0,
            grid=(2, B, n_tiles),                  # (view, image, row-tile); reduction last
            in_specs=[
                pl.BlockSpec((pl.Squeezed(), pl.Squeezed(), tile_rows, kkc_p),
                             lambda v, b, r: (v, b, r, 0)),
                pl.BlockSpec((pl.Squeezed(), kkc_p, c_p), lambda v, b, r: (v, 0, 0)),
                pl.BlockSpec((pl.Squeezed(), 1, c_p), lambda v, b, r: (v, 0, 0)),
                pl.BlockSpec((pl.Squeezed(), c_p, n_p), lambda v, b, r: (v, 0, 0)),
            ],
            out_specs=pl.BlockSpec((1, B, n_p), lambda v, b, r: (v, 0, 0)),
            scratch_shapes=[pltpu.VMEM((1, c_p), jnp.float32)],
        ),
        compiler_params=pltpu.CompilerParams(
            dimension_semantics=("parallel", "arbitrary", "arbitrary"),
            vmem_limit_bytes=vmem_limit),
    )(p, params["w_conv"], params["b_conv"], params["w_fc"])

    # cat(x1, x2) @ W + b  ==  x1 @ W1 + x2 @ W2 + b : sum the per-view partials.
    logits = out_parts[0] + out_parts[1] + params["b_fc"][None, :]
    return logits[:, :params["num_classes"]]


# ------------------------------ Reference ------------------------------------

def reference_forward(two_views, raw):
    """Pure-jnp f32 reference (true module semantics, unpadded params)."""
    hi = jax.lax.Precision.HIGHEST

    def branch(x, w, b):
        p = im2col_3x3_same(x, dtype=jnp.float32)
        y = jnp.einsum("bpk,kc->bpc", p, w, precision=hi) + b[None, None, :]
        y = jnp.maximum(y, 0.0)
        return jnp.mean(y, axis=1)                               # global avg pool

    x1 = branch(two_views[0], raw["w_conv_r"], raw["b_conv_r"])
    x2 = branch(two_views[1], raw["w_conv_v"], raw["b_conv_v"])
    x_cat = jnp.concatenate([x1, x2], axis=1)
    return jnp.dot(x_cat, raw["w_fc"], precision=hi) + raw["b_fc"][None, :]


# --------------------------------- Main ---------------------------------------

if __name__ == "__main__":
    B, C_IN, H, W = 2, 3, 16, 16
    LAST_RECTO = 32           # last_layer_size_recto
    LAST_VERSO = 32           # last_layer_size_verso
    NUM_CLASSES = 7
    K = 3
    KKC = K * K * C_IN

    key = jax.random.PRNGKey(0)
    k_r, k_v, k_wr, k_wv, k_fc, k_bfc = jax.random.split(key, 6)

    # Deterministic inputs (two views, NCHW).
    recto = jax.random.normal(k_r, (B, C_IN, H, W), dtype=jnp.float32)
    verso = jax.random.normal(k_v, (B, C_IN, H, W), dtype=jnp.float32)

    # Deterministic synthetic parameters.  Conv weights stored in im2col layout
    # [K*K*Cin, Cout] (PyTorch conv weight permuted (2,3,1,0) then reshaped).
    raw_params = {
        "w_conv_r": 0.1 * jax.random.normal(k_wr, (KKC, LAST_RECTO), jnp.float32),
        "b_conv_r": jnp.linspace(-0.1, 0.1, LAST_RECTO, dtype=jnp.float32),
        "w_conv_v": 0.1 * jax.random.normal(k_wv, (KKC, LAST_VERSO), jnp.float32),
        "b_conv_v": jnp.linspace(0.1, -0.1, LAST_VERSO, dtype=jnp.float32),
        "w_fc": 0.05 * jax.random.normal(
            k_fc, (LAST_RECTO + LAST_VERSO, NUM_CLASSES), jnp.float32),
        "b_fc": 0.01 * jax.random.normal(k_bfc, (NUM_CLASSES,), jnp.float32),
    }
    params = prepare_params(raw_params, num_classes=NUM_CLASSES)

    out = jax.block_until_ready(
        multi_input_model_forward([recto, verso], params))
    ref = jax.block_until_ready(reference_forward([recto, verso], raw_params))

    # bf16 patches/weights with f32 accumulation: loosen the f32 tolerance a bit.
    np.testing.assert_allclose(np.asarray(out), np.asarray(ref),
                               rtol=2e-2, atol=1e-2)
    assert out.shape == (B, NUM_CLASSES)

    print("KERNEL_OK")
</pallas_src>

<mosaic_0001>
module attributes {stable_mosaic.version = 11 : i64} {
  func.func @two_view_tile_kernel(%arg0: i32, %arg1: i32, %arg2: i32, %arg3: memref<1x1x128x32xbf16, #tpu.memory_space<vmem>>, %arg4: memref<1x32x128xbf16, #tpu.memory_space<vmem>>, %arg5: memref<1x1x128xf32, #tpu.memory_space<vmem>>, %arg6: memref<1x128x128xbf16, #tpu.memory_space<vmem>>, %arg7: memref<1x2x128xf32, #tpu.memory_space<vmem>>, %arg8: memref<1x128xf32, #tpu.memory_space<vmem>>) attributes {dimension_semantics = [#tpu.dimension_semantics<parallel>, #tpu.dimension_semantics<arbitrary>, #tpu.dimension_semantics<arbitrary>], iteration_bounds = array<i64: 2, 2, 2>, scalar_prefetch = 0 : i64, scratch_operands = 1 : i64, tpu.core_type = #tpu.core_type<tc>, window_params = [{transform_indices = @transform_0, window_bounds = array<i64: 1, 1, 128, 32>}, {transform_indices = @transform_1, window_bounds = array<i64: 1, 32, 128>}, {transform_indices = @transform_2, window_bounds = array<i64: 1, 1, 128>}, {transform_indices = @transform_3, window_bounds = array<i64: 1, 128, 128>}, {transform_indices = @transform_4, window_bounds = array<i64: 1, 2, 128>}]} {
    %c0_i32 = arith.constant 0 : i32
    %0 = arith.cmpi eq, %arg2, %c0_i32 : i32
    %1 = arith.extui %0 : i1 to i32
    %c0_i32_0 = arith.constant 0 : i32
    %2 = arith.cmpi ne, %1, %c0_i32_0 : i32
    scf.if %2 {
      %cst_17 = arith.constant 0.000000e+00 : f32
      %22 = vector.broadcast %cst_17 : f32 to vector<1x128xf32>
      %c0_18 = arith.constant 0 : index
      %c0_19 = arith.constant 0 : index
      %23 = vector.load %arg8[%c0_18, %c0_19] : memref<1x128xf32, #tpu.memory_space<vmem>>, vector<1x128xf32>
      tpu.vector_store %arg8[%c0_18, %c0_19], %22 {strides = array<i32>} : memref<1x128xf32, #tpu.memory_space<vmem>>, vector<1x128xf32>,
    } else {
    }
    %c0 = arith.constant 0 : index
    %c0_1 = arith.constant 0 : index
    %c0_2 = arith.constant 0 : index
    %c0_3 = arith.constant 0 : index
    %3 = vector.load %arg3[%c0, %c0_1, %c0_2, %c0_3] : memref<1x1x128x32xbf16, #tpu.memory_space<vmem>>, vector<1x1x128x32xbf16>
    %4 = vector.shape_cast %3 : vector<1x1x128x32xbf16> to vector<128x32xbf16>
    %c0_4 = arith.constant 0 : index
    %c0_5 = arith.constant 0 : index
    %c0_6 = arith.constant 0 : index
    %5 = vector.load %arg4[%c0_4, %c0_5, %c0_6] : memref<1x32x128xbf16, #tpu.memory_space<vmem>>, vector<1x32x128xbf16>
    %6 = vector.shape_cast %5 : vector<1x32x128xbf16> to vector<32x128xbf16>
    %cst = arith.constant dense<0.000000e+00> : vector<128x128xf32>
    %7 = tpu.matmul %4, %6, %cst {dimension_numbers = #tpu.dot_dimension_numbers<[1], [0], [0], [1], [0, 0, 1, 1], [], []>} : vector<128x32xbf16>, vector<32x128xbf16>, vector<128x128xf32> -> vector<128x128xf32>
    %c0_7 = arith.constant 0 : index
    %c0_8 = arith.constant 0 : index
    %c0_9 = arith.constant 0 : index
    %8 = vector.load %arg5[%c0_7, %c0_8, %c0_9] : memref<1x1x128xf32, #tpu.memory_space<vmem>>, vector<1x1x128xf32>
    %9 = vector.shape_cast %8 : vector<1x1x128xf32> to vector<1x128xf32>
    %10 = vector.broadcast %9 : vector<1x128xf32> to vector<128x128xf32>
    %11 = arith.addf %7, %10 : vector<128x128xf32>
    %cst_10 = arith.constant 0.000000e+00 : f32
    %12 = vector.broadcast %cst_10 : f32 to vector<128x128xf32>
    %13 = arith.maximumf %11, %12 : vector<128x128xf32>
    %c0_11 = arith.constant 0 : index
    %c0_12 = arith.constant 0 : index
    %14 = vector.load %arg8[%c0_11, %c0_12] : memref<1x128xf32, #tpu.memory_space<vmem>>, vector<1x128xf32>
    %cst_13 = arith.constant dense<0.000000e+00> : vector<128xf32>
    %15 = vector.multi_reduction <add>, %13, %cst_13 [0] : vector<128x128xf32> to vector<128xf32>
    %16 = vector.shape_cast %15 : vector<128xf32> to vector<1x128xf32>
    %17 = arith.addf %14, %16 : vector<1x128xf32>
    %c0_14 = arith.constant 0 : index
    %c0_15 = arith.constant 0 : index
    %18 = vector.load %arg8[%c0_14, %c0_15] : memref<1x128xf32, #tpu.memory_space<vmem>>, vector<1x128xf32>
    tpu.vector_store %arg8[%c0_14, %c0_15], %17 {strides = array<i32>} : memref<1x128xf32, #tpu.memory_space<vmem>>, vector<1x128xf32>,
    %c1_i32 = arith.constant 1 : i32
    %19 = arith.cmpi eq, %arg2, %c1_i32 : i32
    %20 = arith.extui %19 : i1 to i32
    %c0_i32_16 = arith.constant 0 : i32
    %21 = arith.cmpi ne, %20, %c0_i32_16 : i32
    scf.if %21 {
      %c0_17 = arith.constant 0 : index
      %c0_18 = arith.constant 0 : index
      %22 = vector.load %arg8[%c0_17, %c0_18] : memref<1x128xf32, #tpu.memory_space<vmem>>, vector<1x128xf32>
      %cst_19 = arith.constant 3.906250e-03 : f32
      %23 = vector.broadcast %cst_19 : f32 to vector<1x128xf32>
      %24 = arith.mulf %22, %23 : vector<1x128xf32>
      %25 = arith.truncf %24 : vector<1x128xf32> to vector<1x128xbf16>
      %c0_20 = arith.constant 0 : index
      %c0_21 = arith.constant 0 : index
      %c0_22 = arith.constant 0 : index
      %26 = vector.load %arg6[%c0_20, %c0_21, %c0_22] : memref<1x128x128xbf16, #tpu.memory_space<vmem>>, vector<1x128x128xbf16>
      %27 = vector.shape_cast %26 : vector<1x128x128xbf16> to vector<128x128xbf16>
      %cst_23 = arith.constant dense<0.000000e+00> : vector<1x128xf32>
      %28 = tpu.matmul %25, %27, %cst_23 {dimension_numbers = #tpu.dot_dimension_numbers<[1], [0], [0], [1], [0, 0, 1, 1], [], []>} : vector<1x128xbf16>, vector<128x128xbf16>, vector<1x128xf32> -> vector<1x128xf32>
      %c0_24 = arith.constant 0 : index
      %29 = arith.index_cast %arg1 : i32 to index
      %c0_25 = arith.constant 0 : index
      %30 = vector.load %arg7[%c0_24, %29, %c0_25] : memref<1x2x128xf32, #tpu.memory_space<vmem>>, vector<1x1x128xf32>
      %31 = vector.shape_cast %30 : vector<1x1x128xf32> to vector<1x128xf32>
      %32 = vector.shape_cast %28 : vector<1x128xf32> to vector<1x1x128xf32>
      tpu.vector_store %arg7[%c0_24, %29, %c0_25], %32 {strides = array<i32>} : memref<1x2x128xf32, #tpu.memory_space<vmem>>, vector<1x1x128xf32>,
    } else {
    }
    return
  }
  func.func @transform_0(%arg0: i32, %arg1: i32, %arg2: i32) -> (i32, i32, i32, i32) {
    %c0_i32 = arith.constant 0 : i32
    %c0_i32_0 = arith.constant 0 : i32
    return %arg0, %arg1, %arg2, %c0_i32 : i32, i32, i32, i32
  }
  func.func @transform_1(%arg0: i32, %arg1: i32, %arg2: i32) -> (i32, i32, i32) {
    %c0_i32 = arith.constant 0 : i32
    %c0_i32_0 = arith.constant 0 : i32
    %c0_i32_1 = arith.constant 0 : i32
    return %arg0, %c0_i32, %c0_i32_0 : i32, i32, i32
  }
  func.func @transform_2(%arg0: i32, %arg1: i32, %arg2: i32) -> (i32, i32, i32) {
    %c0_i32 = arith.constant 0 : i32
    %c0_i32_0 = arith.constant 0 : i32
    %c0_i32_1 = arith.constant 0 : i32
    return %arg0, %c0_i32, %c0_i32_0 : i32, i32, i32
  }
  func.func @transform_3(%arg0: i32, %arg1: i32, %arg2: i32) -> (i32, i32, i32) {
    %c0_i32 = arith.constant 0 : i32
    %c0_i32_0 = arith.constant 0 : i32
    %c0_i32_1 = arith.constant 0 : i32
    return %arg0, %c0_i32, %c0_i32_0 : i32, i32, i32
  }
  func.func @transform_4(%arg0: i32, %arg1: i32, %arg2: i32) -> (i32, i32, i32) {
    %c0_i32 = arith.constant 0 : i32
    %c0_i32_0 = arith.constant 0 : i32
    %c0_i32_1 = arith.constant 0 : i32
    return %arg0, %c0_i32, %c0_i32_0 : i32, i32, i32
  }
}

</mosaic_0001>

<bundles_post_ra>
// kernel: tpu_custom_call.1
= control target key start
LH: loop header
LB: loop body
LE: loop exit
PB: predicated region body
PF: predicated region fallthrough
CT: control target
= control target key end

     0   :  { %s1366_s0 = inlined_call_operand.vmem [shape: bf16[2,2,256,32], index: 0, kind: input, shape index: {}]   ;;  %s1367_s1 = inlined_call_operand.vmem [shape: bf16[2,32,128], index: 1, kind: input, shape index: {}]   ;;  %s1368_s2 = inlined_call_operand.vmem [shape: f32[2,1,128], index: 2, kind: input, shape index: {}]   ;;  %s1369_s3 = inlined_call_operand.vmem [shape: bf16[2,128,128], index: 3, kind: input, shape index: {}]   ;;  %s1370_s4 = inlined_call_operand.hbm [shape: f32[2,2,128], index: 4, kind: output, shape index: {}]  }
   0x1   :  { %1382 = sst [smem:[#allocation17_spill]] %s1370_s4 }
   0x2   :  { %9 = vsyncpa [#allocation4], 0 }
   0x3   :  { %11 = vsyncpa [#allocation4 + $0x1], 0  ;;  %s1156_s15 = smov 0   ;;  %s1158_s16 = smov 0  }
   0x4   :  { %s1160_s17 = smov 0   ;;  %s1162_s18 = smov 0  }
   0x5   :  { %s1164_s19 = smov 0   ;;  %s1166_s20 = smov 0  }
   0x6   :  { %s1168_s21 = smov 0   ;;  %s1170_s22 = smov 0  }
   0x7   :  { %s1172_s23 = smov 0   ;;  %s1174_s24 = smov 0  }
   0x8 LB: > { %1383 = sst [smem:[#allocation6_spill]] %s1089_s15  ;;  %s795_s25 = sadd.s32 4294967295, %s1125_s24   ;;  %s1125_s24 = sphi %s1174_s24, %s17_s24   ;;  %s1121_s23 = sphi %s1172_s23, %s1409_s23   ;;  %s1117_s22 = sphi %s1170_s22, %s1408_s22   ;;  %s1113_s21 = sphi %s1168_s21, %s1407_s21   ;;  %s1109_s20 = sphi %s1166_s20, %s1406_s20   ;;  %s1105_s19 = sphi %s1164_s19, %s1405_s19   ;;  %s1101_s18 = sphi %s1162_s18, %s1412_s18   ;;  %s1097_s17 = sphi %s1160_s17, %s1403_s17   ;;  %s1093_s16 = sphi %s1158_s16, %s1411_s16   ;;  %s1089_s15 = sphi %s1156_s15, %s1410_s15  }
   0x9   : > { %1384 = sst [smem:[#allocation7_spill]] %s1097_s17  ;;  %s796_s26 = sadd.s32 4294967294, %s1125_s24  }
   0xa   : > { %1385 = sst [smem:[#allocation8_spill]] %s1113_s21  ;;  %s29_s27 = sadd.s32 1, %s1113_s21 }
   0xb   : > { %1386 = sst [smem:[#allocation9_spill]] %s1117_s22  ;;  %p30_p0 = scmp.ge.s32.totalorder %s29_s27, 2 }
   0xc   : > { %1387 = sst [smem:[#allocation10_spill]] %s1121_s23  ;;  %s32_s28 = sadd.s32 1, %s1117_s22 }
   0xd   : > { %1388 = sst [smem:[#allocation11_spill]] %s1125_s24  ;;  %s36_s29 = sadd.s32 1, %s1121_s23 }
   0xe   : > { %p161_p1 = scmp.ne.s32.totalorder %s1097_s17, %s1093_s16  ;;  %s1414_s27 = smov (%p30_p0, %s29_s27), 0 }
   0xf   : > { %1389 = sst [smem:[#allocation12_spill]] %s1414_s27  ;;  %s1416_s28 = smov (!%p30_p0, %s32_s28), %s1117_s22 }
  0x10   : > { %p162_p2 = scmp.eq.s32.totalorder %s795_s25, 7  ;;  %p167_p3 = scmp.ne.s32.totalorder %s1093_s16, %s1089_s15 }
  0x11   : > { %p34_p4 = scmp.ge.s32.totalorder %s1416_s28, 2  ;;  %p168_p5 = scmp.eq.s32.totalorder %s796_s26, 7 }
  0x12   : > { %p1218_p6 = por %p162_p2, %p161_p1  ;;  %p799_p7 = scmp.ge.s32.totalorder %s1125_s24, 1 }
  0x13   : > { %s1418_s28 = smov (%p34_p4, %s1416_s28), 0  ;;  %s1420_s29 = smov (!%p34_p4, %s36_s29), %s1121_s23 }
  0x14   : > { %1391 = sst [smem:[#allocation13_spill]] %s1418_s28  ;;  %p1226_p8 = por %p168_p5, %p167_p3 }
  0x15   : > { %p225_p9 = scmp.lt.s32.totalorder %s1125_s24, 9  ;;  %p38_p10 = scmp.ge.s32.totalorder %s1420_s29, 2 }
  0x16   : > { %s1392_s5 = scalar_select %p1226_p8, 1, 0 }
  0x17   : > { %p226_p11 = pnand %p799_p7, %p225_p9  ;;  %s1422_s29 = smov (%p38_p10, %s1420_s29), 0 }
  0x18   : > { %1393 = sst [smem:[#allocation14_spill]] %s1392_s5  ;;  %s148_s6 = ssub.s32 %s1121_s23, %s1422_s29 }
  0x19   : > { %1394 = sst [smem:[#allocation15_spill]] %s1422_s29  ;;  %s151_s7 = sadd.s32 1, %s1097_s17 }
  0x1a   : > { %p149_p12 = scmp.eq.s32.totalorder %s148_s6, 0  ;;  %229 = sbr.rel (%p226_p11) target bundleno = 572 (0x23c), region = 36 }
  0x1b   : > { %s1372_s9 = sand.u32 (!%p226_p11), 1, %s1093_s16   ;;  %s801_s10 = sshll.u32 (!%p226_p11), %s1101_s18, 4 }
  0x1c   : > { %s1237_s8 = scalar_select %p149_p12, %s1097_s17, %s151_s7  }
  0x1d   : > { %s1243_s11 = sshll.u32 (!%p226_p11), %s1372_s9, 1  ;;  %p273_p13 = scmp.lt.s32.totalorder (!%p226_p11), %s1109_s20, 1 }
  0x1e   : > { %1395 = sst [smem:[#allocation16_spill]] %s1237_s8  ;;  %p275_p0 = scmp.lt.s32.totalorder (!%p226_p11), %s1105_s19, 1 }
  0x1f   : > { %p277_p1 = scmp.lt.s32.totalorder (!%p226_p11), %s801_s10, 31  ;;  %s271_s4 = scalar_lea.vmem (!%p226_p11), [#allocation3], %s1243_s11 }
  0x20   : > { %p809_p2 = scmp.ne.s32.totalorder (!%p226_p11), %s1101_s18, 0 }
  0x21   : > { %s1248_s12 = scalar_select %p273_p13, %s1109_s20, 1 }
  0x22   : > { %s276_s13 = scalar_select %p275_p0, %s1105_s19, 1 }
  0x23   : > { %s803_s14 = sshll.u32 %s1248_s12, 6  ;;  %s842_s26 = sshll.u32 %s1248_s12, 4  ;;  %v1127_v0 = vmov (!%p809_p2), 0.0  }
  0x24   : > { %s802_s25 = sshll.u32 %s276_s13, 5  ;;  %s1424_s10 = smov (!%p277_p1, %s801_s10), 31  ;;  %304 = vst [vmem:[#allocation2] sm:$0x1] (!%p809_p2), %v1127_v0 }
  0x25   : > { %s290_s29 = scalar_lea.vmem %s1367_s1, %s842_s26  ;;  %s293_s27 = scalar_lea.vmem %s1368_s2, %s1248_s12 }
  0x26   : > { %s280_s23 = sadd.s32 %s802_s25, %s1424_s10  ;;  %s1263_s8 = scalar_lea.vmem %s1369_s3, %s803_s14 }
  0x27   : > { %s282_s17 = sadd.s32 %s803_s14, %s280_s23  ;;  %303 = sbr.rel (%p809_p2) target bundleno = 46 (0x2e), region = 40 }
  0x28   : > { %s804_s5 = sshll.u32 %s282_s17, 2 }
  0x29   : > { %s1268_s24 = scalar_lea.vmem %s1366_s0, %s804_s5 }
  0x2e PF: > { %v997_v1 = vld [vmem:[%s290_s29] sm:$0xff]   ;;  %v998_v2 = vld [vmem:[%s290_s29 + $0x8] sm:$0xff]   ;;  %vm384_vm0 = vcmask 261120   ;;  %v1001_v5 = vld [vmem:[%s1268_s24 + $0x10] sm:$0xff]   ;;  %p829_p3 = scmp.ne.s32.totalorder %s1101_s18, 1 }
  0x2f   : > { %863 = vmatprep.subr.bf16.mxu0 %v997_v1  ;;  %v999_v3 = vld [vmem:[%s1268_s24] sm:$0xff]   ;;  %903 = vmatprep.subr.bf16.mxu1 %v997_v1  ;;  %v1000_v4 = vld [vmem:[%s1268_s24 + $0x8] sm:$0xff]   ;;  %v1005_v8 = vld [vmem:[%s1268_s24 + $0x30] sm:$0xff]   ;;  %vm1129_vm1 = vmmov (!%p829_p3), 0   ;;  %s657_s18 = scalar_lea.vmem (!%p829_p3), %s271_s4, %s1105_s19 [#allocation3] }
  0x30   : > { %864 = vmatpush3.bf16.msra.mxu0 %v997_v1  ;;  %905 = vmatpush3.bf16.msra.mxu1 %v997_v1  ;;  %v1003_v6 = vld [vmem:[%s1268_s24 + $0x20] sm:$0xff]   ;;  %v1004_v7 = vld [vmem:[%s1268_s24 + $0x28] sm:$0xff]   ;;  %v1002_v9 = vld [vmem:[%s1268_s24 + $0x18] sm:$0xff]  }
  0x31   : > { %865 = vmatprep.subr.bf16.mxu0 %v998_v2  ;;  %867 = vmatprep.mubr.msk.bf16.mxu0 %vm384_vm0, %v999_v3  ;;  %v1006_v10 = vld [vmem:[%s1268_s24 + $0x38] sm:$0xff]   ;;  %v810_v11 = vld [vmem:[%s293_s27] ss:$0 sm:$0xff] }
  0x32   : > { %904 = vmatprep.subr.bf16.mxu1 %v998_v2  ;;  %875 = vmatprep.mubr.msk.bf16.mxu1 %vm384_vm0, %v1003_v6 }
  0x34   : > { %866 = vmatpush3.bf16.msra.mxu0 %v998_v2  ;;  %906 = vmatpush3.bf16.msra.mxu1 %v998_v2 }
  0x37   : > { %868 = vmatmul.mubr.msk.bf16.vlgmr.msra.gmra.mrb[0].mxu0 %vm384_vm0, %v1000_v4  ;;  %876 = vmatmul.mubr.msk.bf16.vlgmr.msra.gmra.mrb[0].mxu1 %vm384_vm0, %v1004_v7 }
  0x38   : > { %871 = vmatprep.mubr.msk.bf16.mxu0 %vm384_vm0, %v1001_v5  ;;  %879 = vmatprep.mubr.msk.bf16.mxu1 %vm384_vm0, %v1005_v8 }
  0x3f   : > { %872 = vmatmul.mubr.msk.bf16.gmra.mrb[4].mxu0 %vm384_vm0, %v1002_v9  ;;  %880 = vmatmul.mubr.msk.bf16.gmra.mrb[4].mxu1 %vm384_vm0, %v1006_v10 }
 0x10a   : > { %v869_v12 = vpop.f32.mrb[0].mxu0  ;;  %v877_v13 = vpop.f32.mrb[0].mxu1 }
 0x10b   : > { %v443_v14 = vpop.f32.mrb[1].mxu0  ;;  %v475_v15 = vpop.f32.mrb[1].mxu1  ;;  %v452_v21 = vadd.f32 %v869_v12, %v810_v11  ;;  %v484_v53 = vadd.f32 %v877_v13, %v810_v11 }
 0x10c   : > { %v444_v16 = vadd.f32 %v810_v11, %v443_v14  ;;  %v870_v17 = vpop.f32.mrb[2].mxu0  ;;  %v878_v18 = vpop.f32.mrb[2].mxu1  ;;  %v476_v46 = vadd.f32 %v810_v11, %v475_v15 }
 0x10d   : > { %v446_v19 = vpop.f32.mrb[3].mxu0  ;;  %v478_v20 = vpop.f32.mrb[3].mxu1  ;;  %v455_v24 = vadd.f32 %v870_v17, %v810_v11  ;;  %v508_v26 = vmax.f32 %v452_v21, 0.0  ;;  %v487_v56 = vadd.f32 %v878_v18, %v810_v11  ;;  %v516_v59 = vmax.f32 %v484_v53, 0.0  ;;  %v522_v17 = vld [vmem:[#allocation2] sm:$0x1] }
 0x10e   : > { %v447_v22 = vadd.f32 %v810_v11, %v446_v19  ;;  %v506_v23 = vmax.f32 %v444_v16, 0.0  ;;  %v514_v51 = vmax.f32 %v476_v46, 0.0  ;;  %v479_v52 = vadd.f32 %v810_v11, %v478_v20  ;;  %v1008_v21 = vld [vmem:[%s1263_s8 + $0x8] sm:$0xff] (!%p829_p3)  }
 0x10f   : > { %v509_v32 = vmax.f32 %v455_v24, 0.0  ;;  %v517_v61 = vmax.f32 %v487_v56, 0.0  ;;  %v1128_v20 = vmov (!%p829_p3), 0.0   ;;  %v1011_v24 = vld [vmem:[%s1263_s8 + $0x20] sm:$0xff] (!%p829_p3)  }
 0x110   : > { %v507_v25 = vmax.f32 %v447_v22, 0.0  ;;  %v515_v57 = vmax.f32 %v479_v52, 0.0  ;;  %883 = vmatprep.subr.bf16.mxu0 (!%p829_p3), %v1128_v20  ;;  %899 = vmatprep.mubr.msk.bf16.mxu0 (!%p829_p3), %vm1129_vm1, %v1128_v20  ;;  %v1009_v22 = vld [vmem:[%s1263_s8 + $0x10] sm:$0xff] (!%p829_p3)  }
 0x112   : > { %v523_v27 = vadd.f32 %v507_v25, %v506_v23  ;;  %v873_v28 = vpop.f32.mrb[4].mxu0  ;;  %v881_v29 = vpop.f32.mrb[4].mxu1  ;;  %v1010_v23 = vld [vmem:[%s1263_s8 + $0x18] sm:$0xff] (!%p829_p3)   ;;  %v1012_v25 = vld [vmem:[%s1263_s8 + $0x28] sm:$0xff] (!%p829_p3)  }
 0x113   : > { %v459_v30 = vpop.f32.mrb[5].mxu0  ;;  %v491_v31 = vpop.f32.mrb[5].mxu1  ;;  %v468_v39 = vadd.f32 %v873_v28, %v810_v11  ;;  %v500_v1 = vadd.f32 %v881_v29, %v810_v11  ;;  %v1014_v29 = vld [vmem:[%s1263_s8 + $0x38] sm:$0xff] (!%p829_p3)  }
 0x114   : > { %v524_v33 = vadd.f32 %v523_v27, %v508_v26  ;;  %v460_v34 = vadd.f32 %v810_v11, %v459_v30  ;;  %v874_v35 = vpop.f32.mrb[6].mxu0  ;;  %v882_v36 = vpop.f32.mrb[6].mxu1  ;;  %v492_v58 = vadd.f32 %v810_v11, %v491_v31  ;;  %v1013_v26 = vld [vmem:[%s1263_s8 + $0x30] sm:$0xff] (!%p829_p3)  }
 0x115   : > { %v462_v37 = vpop.f32.mrb[7].mxu0  ;;  %v494_v38 = vpop.f32.mrb[7].mxu1  ;;  %v471_v44 = vadd.f32 %v874_v35, %v810_v11  ;;  %v512_v47 = vmax.f32 %v468_v39, 0.0  ;;  %v503_v4 = vadd.f32 %v882_v36, %v810_v11  ;;  %v520_v6 = vmax.f32 %v500_v1, 0.0 }
 0x116   : > { %v510_v40 = vmax.f32 %v460_v34, 0.0  ;;  %v525_v41 = vadd.f32 %v524_v33, %v509_v32  ;;  %v463_v42 = vadd.f32 %v810_v11, %v462_v37  ;;  %v518_v63 = vmax.f32 %v492_v58, 0.0 }
 0x117   : > { %v513_v49 = vmax.f32 %v471_v44, 0.0  ;;  %v495_v0 = vadd.f32 %v810_v11, %v494_v38  ;;  %v521_v8 = vmax.f32 %v503_v4, 0.0  ;;  %v1007_v11 = vld [vmem:[%s1263_s8] sm:$0xff] (!%p829_p3)  }
 0x118   : > { %v526_v43 = vadd.f32 %v525_v41, %v510_v40  ;;  %v511_v45 = vmax.f32 %v463_v42, 0.0  ;;  %884 = vmatpush3.bf16.msra.mxu0 (!%p829_p3), %v1007_v11 }
 0x119   : > { %v519_v5 = vmax.f32 %v495_v0, 0.0  ;;  %885 = vmatprep.subr.bf16.mxu0 (!%p829_p3), %v1128_v20 }
 0x11a   : > { %v527_v48 = vadd.f32 %v526_v43, %v511_v45 }
 0x11c   : > { %v528_v50 = vadd.f32 %v527_v48, %v512_v47  ;;  %886 = vmatpush3.bf16.msra.mxu0 (!%p829_p3), %v1008_v21 }
 0x11d   : > { %887 = vmatprep.subr.bf16.mxu0 (!%p829_p3), %v1128_v20 }
 0x11e   : > { %v529_v54 = vadd.f32 %v528_v50, %v513_v49 }
 0x120   : > { %v530_v55 = vadd.f32 %v529_v54, %v514_v51  ;;  %888 = vmatpush3.bf16.msra.mxu0 (!%p829_p3), %v1009_v22 }
 0x121   : > { %889 = vmatprep.subr.bf16.mxu0 (!%p829_p3), %v1128_v20 }
 0x122   : > { %v531_v60 = vadd.f32 %v530_v55, %v515_v57 }
 0x124   : > { %v532_v62 = vadd.f32 %v531_v60, %v516_v59  ;;  %890 = vmatpush3.bf16.msra.mxu0 (!%p829_p3), %v1010_v23 }
 0x125   : > { %891 = vmatprep.subr.bf16.mxu0 (!%p829_p3), %v1128_v20 }
 0x126   : > { %v533_v2 = vadd.f32 %v532_v62, %v517_v61 }
 0x128   : > { %v534_v3 = vadd.f32 %v533_v2, %v518_v63  ;;  %892 = vmatpush3.bf16.msra.mxu0 (!%p829_p3), %v1011_v24 }
 0x129   : > { %893 = vmatprep.subr.bf16.mxu0 (!%p829_p3), %v1128_v20 }
 0x12a   : > { %v535_v7 = vadd.f32 %v534_v3, %v519_v5 }
 0x12c   : > { %v536_v9 = vadd.f32 %v535_v7, %v520_v6  ;;  %894 = vmatpush3.bf16.msra.mxu0 (!%p829_p3), %v1012_v25 }
 0x12d   : > { %895 = vmatprep.subr.bf16.mxu0 (!%p829_p3), %v1128_v20 }
 0x12e   : > { %v537_v10 = vadd.f32 %v536_v9, %v521_v8 }
 0x130   : > { %v538_v12 = vrot.slane %v537_v10, 4  ;;  %896 = vmatpush3.bf16.msra.mxu0 (!%p829_p3), %v1013_v26 }
 0x131   : > { %897 = vmatprep.subr.bf16.mxu0 (!%p829_p3), %v1128_v20 }
 0x132   : > { %v539_v13 = vadd.f32 %v538_v12, %v537_v10 }
 0x134   : > { %v540_v14 = vrot.slane %v539_v13, 2  ;;  %898 = vmatpush3.bf16.msra.mxu0 (!%p829_p3), %v1014_v29 }
 0x136   : > { %v541_v15 = vadd.f32 %v540_v14, %v539_v13 }
 0x138   : > { %v542_v16 = vrot.slane %v541_v15, 1  ;;  %549 = sbr.rel (%p829_p3) target bundleno = 545 (0x221), region = 44 }
 0x13a   : > { %v543_v18 = vadd.f32 %v542_v16, %v541_v15 }
 0x13c   : > { %v544_v19 = vadd.f32 %v543_v18, %v522_v17 }
 0x13e   : > { %545 = vst [vmem:[#allocation2] sm:$0x1] %v544_v19 }
 0x145   : > { %v550_v27 = vld [vmem:[#allocation2] sm:$0x1] }
 0x146   : > { %v551_v28 = vmul.f32 0.00390625, %v550_v27 }
 0x148   : > { %v552_v30 = vpack.c.bf16 %v551_v28, %v551_v28 }
 0x14a   : > { %900 = vmatmul.mubr.bf16.vlgmr.msra.gmra.mrb[0].mxu0 %v552_v30 }
 0x21d   : > { %v651_v31 = vpop.f32.mrb[0].mxu0 }
 0x21e   : > { %658 = vst [vmem:[%s657_s18] sm:$0x1] %v651_v31  ;;  %v901_v32 = vpop.f32.mrb[1].mxu0 }
 0x21f   : > { %v654_v33 = vpop.f32.mrb[2].mxu0 }
 0x220   : > { %v902_v34 = vpop.f32.mrb[3].mxu0 }
 0x221 PF: > { %s839_s21 = sshll.u32 %s1109_s20, 5  ;;  %s1396_s24 = sld [smem:[#allocation17_spill]] }
 0x222   : > { %s673_s29 = sshll.u32 %s271_s4, 4  ;;  %s1398_s19 = sand.u32 1, %s1093_s16   ;;  %s674_s29 = int_to_ptr.vmem [resolvable:$true] %s673_s29 }
 0x223   : > { %s660_s5 = scalar_lea.sflag [#allocation4], %s1398_s19  ;;  %s1015_s8 = scalar_lea.vmem %s674_s29, 32 }
 0x224   : > { %p1016_p4 = scmp.ne.s32.totalorder %s674_s29, %s1015_s8  ;;  %s1130_s9 = smov [#allocation3]  }
 0x225   : > { %s1019_s10 = sshll.u32 %s1130_s9, 4  ;;  %s1020_s10 = int_to_ptr.vmem [resolvable:$false] %s1019_s10 }
 0x226   : > { %p1017_p5 = pnand %p1016_p4, %p1218_p6  ;;  %s1021_s12 = scalar_lea.vmem %s1020_s10, 64 }
 0x227   : > { %s1397_s27 = smov %s1396_s24  ;;  %s1309_s28 = scalar_lea.hbm %s1396_s24, %s839_s21 }
 0x228   : > { %p1018_p7 = pneg %p1017_p5  ;;  %p1022_p9 = scmp.lt.s32.totalorder %s674_s29, %s1020_s10 }
 0x229   : > { %p1023_p10 = scmp.lt.s32.totalorder %s1021_s12, %s1015_s8 }
 0x22b   : > { %p1024_p11 = por %p1023_p10, %p1022_p9 }
 0x22d   : > { %p1025_p12 = pnand %p1024_p11, %p1018_p7 }
 0x22f   : > { %1028 = shalt.err (!%p1025_p12)
}
 0x230   : > { %s1029_s4 = scalar_lea.hbm %s1309_s28, 32  ;;  %s1033_s14 = scalar_lea.hbm %s1397_s27, 64 }
 0x231   : > { %p1030_p13 = scmp.ne.s32.totalorder %s1309_s28, %s1029_s4  ;;  %p1034_p2 = scmp.lt.u32.totalorder %s1309_s28, %s1397_s27 }
 0x232   : > { %p1035_p3 = scmp.lt.u32.totalorder %s1033_s14, %s1029_s4  ;;  %p1037_p5 = scmp.lt.u32.totalorder %s1029_s4, %s1309_s28 }
 0x233   : > { %p1031_p0 = pnand %p1030_p13, %p1218_p6 }
 0x234   : > { %p1036_p4 = por %p1035_p3, %p1034_p2 }
 0x235   : > { %p1032_p1 = pneg %p1031_p0 }
 0x236   : > { %p1038_p7 = por %p1037_p5, %p1036_p4 }
 0x238   : > { %p1039_p9 = pnand %p1038_p7, %p1032_p1 }
 0x23a   : > { %1042 = shalt.err (!%p1039_p9)
}
 0x23b   : > { %907 = dma.vmem_to_hbm [thread:$0]  (%p1218_p6), %s674_s29, 32, %s1309_s28, %s660_s5  }
 0x23c PF: > { %s1399_s6 = sld [smem:[#allocation11_spill]]  ;;  %s1400_s7 = sld [smem:[#allocation6_spill]] }
 0x242   : > { %p913_p10 = scmp.ge.s32.totalorder %s1399_s6, 2  ;;  %s685_s15 = sand.u32 1, %s1400_s7  }
 0x243   : > { %s686_s17 = scalar_lea.sflag [#allocation4], %s685_s15 }
 0x244   : > { %p910_p11 = pnand %p913_p10, %p1226_p8 }
 0x246   : > { %1084 = dma.done.wait (!%p910_p11), %s686_s17, 32  }
 0x247   : > { %1086 = vsyncadd (!%p910_p11), %s686_s17, 4294967264  ;;  %s17_s24 = sadd.s32 1, %s1399_s6   ;;  %s1402_s18 = sld [smem:[#allocation7_spill]] }
 0x248   : > { %p14_p12 = scmp.ge.s32.totalorder %s17_s24, 10   ;;  %s1403_s17 = sld [smem:[#allocation16_spill]] }
 0x249   : > { %s1404_s30 = sld [smem:[#allocation8_spill]]  ;;  %s1405_s19 = sld [smem:[#allocation9_spill]] }
 0x24a   : > { %s1406_s20 = sld [smem:[#allocation10_spill]]  ;;  %s1407_s21 = sld [smem:[#allocation12_spill]] }
 0x24b   : > { %s1408_s22 = sld [smem:[#allocation13_spill]]  ;;  %s1409_s23 = sld [smem:[#allocation15_spill]] }
 0x24c   : > { %s1410_s15 = smov %s1093_s16  ;;  %16 = sbr.rel (!%p14_p12) target bundleno = 8 (0x8), region = 89 }
 0x24d   : > { %s1411_s16 = smov %s1402_s18 }
 0x24f   : > { %s1412_s18 = smov %s1404_s30 }
 0x253   :  { %691 = vsyncpa [#allocation4], 1 }
 0x254   :  { %693 = vsyncpa [#allocation4 + $0x1], 1 }

</bundles_post_ra>
